<compile_context>
chip_gen: v7x
topology: tpu7x:2x2x1
jax: 0.10.0
libtpu: 0.0.40
codegen_flags: <defaults>
</compile_context>

<pallas_src>
import jax
import jax.numpy as jnp
from jax import lax
from jax.experimental import pallas as pl
from jax.experimental.pallas import tpu as pltpu

WINDOW_SIZE = 30
D_FF = 2048          # PyTorch TransformerEncoderLayer default dim_feedforward
N_LAYERS = 2
LN_EPS = 1e-5        # PyTorch default layer_norm_eps
LANE = 128           # TPU vreg lane width


def transformer_kernel(scal_ref, out_ref):
    """scal_ref: f32[4] SMEM -- [layer-2 ln2.beta, final bias, sum(final weight), pad]
       out_ref:  f32[1, B_pad] VMEM -- lane-dense output, B_pad multiple of 128;
                 wrapper slices [:, :B] and reshapes to (B, 1)."""
    be2 = scal_ref[0]      # layer-2 ln2.beta  (== encoder output everywhere)
    lb = scal_ref[1]       # final Linear bias
    lw_sum = scal_ref[2]   # sum over the 30 final Linear weights (precomputed)
    val = be2 * lw_sum + lb
    out_ref[...] = jnp.full(out_ref.shape, val, dtype=out_ref.dtype)


def transformer_forward(x, y, params):
    """x: (B, WINDOW_SIZE, 1) like the PyTorch batch_first input; y is unused
    (the PyTorch forward ignores it too).  In eval mode the output does not
    depend on x (LayerNorm over the size-1 feature axis collapses to beta),
    so neither x nor the attention/FF weights are DMA'd into the kernel."""
    del y
    B = x.shape[0]
    scal, _w1, _b1, _w2, lw = params

    # The three scalars the collapsed forward needs, packed into a 1-D f32[4]
    # SMEM block (pads to 16 bytes, vs ~4 KiB for the old (3,16) 2-D block).
    be2 = scal[N_LAYERS - 1, 12]             # layer-2 ln2.beta
    lb = scal[2, 0]                          # final linear bias
    lw_sum = jnp.sum(lw)                     # tiny XLA reduce, fuses upstream
    smem_scal = jnp.stack(
        [be2, lb, lw_sum, jnp.zeros((), jnp.float32)]).astype(jnp.float32)

    B_pad = LANE * pl.cdiv(B, LANE)          # unmasked lane-dense vst
    out_lane = pl.pallas_call(
        transformer_kernel,
        out_shape=jax.ShapeDtypeStruct((1, B_pad), jnp.float32),
        in_specs=[pl.BlockSpec(memory_space=pltpu.MemorySpace.SMEM)],
        out_specs=pl.BlockSpec(memory_space=pltpu.MemorySpace.VMEM),
        cost_estimate=pl.CostEstimate(
            flops=2, transcendentals=0, bytes_accessed=4 * B_pad + 16),
    )(smem_scal)
    return out_lane[0, :B].reshape(B, 1)


def reference_forward(x, y, params):
    """Literal (un-simplified) eval-mode math of the PyTorch module in pure
    JAX, used only to verify the kernel's exact simplification in __main__."""
    del y
    scal, w1, b1, w2, lw = params
    h = x[..., 0].astype(jnp.float32)                          # (B, S)
    for l in range(N_LAYERS):
        wq, wk, wv = scal[l, 0], scal[l, 1], scal[l, 2]
        bq, bk, bv = scal[l, 3], scal[l, 4], scal[l, 5]
        wo, bo, b2 = scal[l, 6], scal[l, 7], scal[l, 8]
        g1, be1, g2, be2 = scal[l, 9], scal[l, 10], scal[l, 11], scal[l, 12]
        # self-attention (d_model=1, nhead=1, scale = 1/sqrt(1) = 1)
        q = h * wq + bq
        k = h * wk + bk
        v = h * wv + bv
        scores = q[:, :, None] * k[:, None, :]                 # (B, S, S)
        p = jax.nn.softmax(scores, axis=-1)
        sa = jnp.sum(p * v[:, None, :], axis=-1) * wo + bo
        x1 = h + sa
        h = (x1 - x1) * lax.rsqrt(jnp.zeros_like(x1) + LN_EPS) * g1 + be1
        # feed-forward 1 -> 2048 -> 1
        ff_h = jnp.maximum(h[:, :, None] * w1[l] + b1[l], 0.0)  # (B, S, D_FF)
        ff = jnp.sum(ff_h * w2[l], axis=-1) + b2
        x2 = h + ff
        h = (x2 - x2) * lax.rsqrt(jnp.zeros_like(x2) + LN_EPS) * g2 + be2
    return jnp.sum(h * lw[0][None, :], axis=-1, keepdims=True) + scal[2, 0]


def init_params(key):
    """Deterministic synthetic parameters matching the PyTorch module's shapes
    (all d_model=1 projections collapse to scalars)."""
    ks = jax.random.split(key, 6)
    # per-layer scalars, indices:
    # 0:wq 1:wk 2:wv 3:bq 4:bk 5:bv 6:wo 7:bo 8:b2 9:ln1_g 10:ln1_b 11:ln2_g 12:ln2_b
    layer_scal = jax.random.normal(ks[0], (N_LAYERS, 13), jnp.float32) * 0.3
    scal = jnp.zeros((3, 16), jnp.float32)
    scal = scal.at[:N_LAYERS, :13].set(layer_scal)
    lb = jax.random.normal(ks[1], (), jnp.float32) * 0.1       # final linear bias
    scal = scal.at[2, 0].set(lb)
    w1 = jax.random.normal(ks[2], (N_LAYERS, D_FF), jnp.float32) * 0.05  # (2048,1) squeezed
    b1 = jax.random.normal(ks[3], (N_LAYERS, D_FF), jnp.float32) * 0.05
    w2 = jax.random.normal(ks[4], (N_LAYERS, D_FF), jnp.float32) * 0.05  # (1,2048) squeezed
    lw = jax.random.normal(ks[5], (1, WINDOW_SIZE), jnp.float32) * 0.1   # Linear(30,1).weight
    return scal, w1, b1, w2, lw


if __name__ == "__main__":
    key = jax.random.PRNGKey(0)
    kx, ky, kp = jax.random.split(key, 3)
    B = 2
    x = jax.random.normal(kx, (B, WINDOW_SIZE, 1), jnp.float32)
    y = jax.random.normal(ky, (B, 1), jnp.float32)   # unused by forward, kept for signature
    params = init_params(kp)

    out = transformer_forward(x, y, params)
    jax.block_until_ready(out)
    assert out.shape == (B, 1) and out.dtype == jnp.float32

    # verify the exact LayerNorm(d_model=1) simplification against the literal math
    ref = reference_forward(x, y, params)
    assert jnp.allclose(out, ref, rtol=1e-5, atol=1e-5), (out, ref)

    print("KERNEL_OK")
</pallas_src>

<mosaic_0001>
module attributes {stable_mosaic.version = 11 : i64} {
  func.func @transformer_kernel(%arg0: memref<4xf32, #tpu.memory_space<smem>>, %arg1: memref<1x128xf32, #tpu.memory_space<vmem>>) attributes {dimension_semantics = [], scalar_prefetch = 0 : i64, scratch_operands = 0 : i64, tpu.core_type = #tpu.core_type<tc>} {
    %c0 = arith.constant 0 : index
    %0 = memref.load %arg0[%c0] : memref<4xf32, #tpu.memory_space<smem>>
    %c1 = arith.constant 1 : index
    %1 = memref.load %arg0[%c1] : memref<4xf32, #tpu.memory_space<smem>>
    %c2 = arith.constant 2 : index
    %2 = memref.load %arg0[%c2] : memref<4xf32, #tpu.memory_space<smem>>
    %3 = arith.mulf %0, %2 : f32
    %4 = arith.addf %3, %1 : f32
    %5 = vector.broadcast %4 : f32 to vector<1x128xf32>
    %c0_0 = arith.constant 0 : index
    %c0_1 = arith.constant 0 : index
    %6 = vector.load %arg1[%c0_0, %c0_1] : memref<1x128xf32, #tpu.memory_space<vmem>>, vector<1x128xf32>
    tpu.vector_store %arg1[%c0_0, %c0_1], %5 {strides = array<i32>} : memref<1x128xf32, #tpu.memory_space<vmem>>, vector<1x128xf32>,
    return
  }
}

</mosaic_0001>

<bundles_post_ra>
// kernel: tpu_custom_call.1
= control target key start
LH: loop header
LB: loop body
LE: loop exit
PB: predicated region body
PF: predicated region fallthrough
CT: control target
= control target key end

     0   :  { %6 = vsyncpa [#allocation4], 0  ;;  %s118_s0 = inlined_call_operand.hbm [shape: f32[4], index: 0, kind: input, shape index: {}]   ;;  %s119_s1 = inlined_call_operand.hbm [shape: f32[1,128], index: 1, kind: output, shape index: {}]  }
   0x1   :  { %7 = vsyncpa [#allocation3], 0  ;;  %s46_s8 = scalar_lea.hbm %s118_s0, 16 }
   0x2   :  { %p47_p0 = scmp.ne.s32.totalorder %s118_s0, %s46_s8  ;;  %p50_p1 = scmp.lt.u32.totalorder %s46_s8, %s118_s0 }
   0x4   :  { %p52_p2 = pnand %p50_p1, %p47_p0 }
   0x6   :  { %55 = shalt.err (!%p52_p2)
}
   0x7   :  { %s82_s13 = smov [#allocation2]  }
   0x8   :  { %15 = dma.hbm_to_smem %s118_s0, 16, %s82_s13, [#allocation4]  }
   0x9   :  { %78 = dma.done.wait [#allocation4], 16  }
   0xa   :  { %79 = vsyncadd [#allocation4], 4294967280 }
   0xb   :  { %19 = sfence }
   0xc   :  { %s20_s16 = sld [smem:[#allocation2]]  ;;  %s42_s17 = sld [smem:[#allocation2 + $0x1]] }
   0xd   :  { %s43_s18 = sld [smem:[#allocation2 + $0x2]]  ;;  %s83_s20 = smov [#allocation5]  }
   0xe   :  { %s33_s21 = sshll.u32 %s83_s20, 4  ;;  %s34_s21 = int_to_ptr.vmem [resolvable:$true] %s33_s21 }
   0xf   :  { %s56_s23 = scalar_lea.vmem %s34_s21, 16  ;;  %s60_s24 = scalar_lea.vmem %s34_s21, 32 }
  0x10   :  { %p57_p3 = scmp.ne.s32.totalorder %s34_s21, %s56_s23  ;;  %p61_p4 = scmp.lt.s32.totalorder %s34_s21, %s34_s21 }
  0x11   :  { %p62_p5 = scmp.lt.s32.totalorder %s60_s24, %s56_s23 }
  0x13   :  { %s23_s19 = smul.f32 %s43_s18, %s20_s16  ;;  %p63_p6 = por %p62_p5, %p61_p4 }
  0x15   :  { %s24_s22 = sadd.f32 %s42_s17, %s23_s19  ;;  %p64_p7 = pnand %p63_p6, %p57_p3 }
  0x17   :  { %v25_v0 = vstv %s24_s22 }
  0x18   :  { %26 = vst [vmem:[#allocation5] sm:$0x1] %v25_v0 }
  0x19   :  { %67 = shalt.err (!%p64_p7)
}
  0x1a   :  { %s68_s26 = scalar_lea.hbm %s119_s1, 16 }
  0x1b   :  { %p69_p8 = scmp.ne.s32.totalorder %s119_s1, %s68_s26  ;;  %p72_p9 = scmp.lt.u32.totalorder %s68_s26, %s119_s1 }
  0x1d   :  { %p74_p10 = pnand %p72_p9, %p69_p8 }
  0x1f   :  { %77 = shalt.err (!%p74_p10)
}
  0x20   :  { %36 = dma.vmem_to_hbm [thread:$0]  %s34_s21, 16, %s119_s1, [#allocation3]  }
  0x21   :  { %80 = dma.done.wait [#allocation3], 16  }
  0x22   :  { %81 = vsyncadd [#allocation3], 4294967280 }
  0x23   :  { %40 = vsyncpa [#allocation3], 1 }
  0x24   :  { %41 = vsyncpa [#allocation4], 1 }

</bundles_post_ra>
